<compile_context>
chip_gen: v7x
topology: tpu7x:2x2x1
jax: 0.10.0
libtpu: 0.0.40
codegen_flags: <defaults>
</compile_context>

<pallas_src>
import functools

import jax
import jax.numpy as jnp
from jax import lax
from jax.experimental import pallas as pl
from jax.experimental.pallas import tpu as pltpu


# ---------------------------------------------------------------------------
# Fused kernel: one block of Bt batch elements per grid step.
#   qkv   = x_flat @ Wqkv                  (1 MXU matmul, Bt*T rows, scale folded into Wq)
#   per head (batched over Bt): s = q @ k^T ; causal mask ; softmax ; o = p @ v
#   head outputs -> VMEM scratch column slices (torch.cat layout)
#   y     = att @ Wp^T + b                 (projection fused in, lane-dense store)
# ---------------------------------------------------------------------------
def fused_mha_kernel(x_ref, wqkv_ref, wp_ref, bp_ref, out_ref, att_ref, *,
                     num_heads, head_size, batch_block, seq_len):
    Bt, T = batch_block, seq_len
    H, HS = num_heads, head_size
    C = H * HS
    N = Bt * T

    # (Bt, T, C) -> (Bt*T, C): leading-dim merge only (free, no relayout).
    x = x_ref[...].reshape(N, C)                       # compute dtype (bf16 or f32)
    wqkv = wqkv_ref[...]                               # (C, 3C), C**-0.5 folded into Wq

    # Single MXU push for q|k|v of all heads and all Bt*T rows, f32 accumulation.
    qkv = jnp.dot(x, wqkv, preferred_element_type=jnp.float32)      # (N, 3C) f32
    qkv_c = qkv.astype(x.dtype)                        # one cast -> MXU-native operands below

    # Causal mask built in-kernel (couple of VPU ops, hides under MXU); reused by all b, h.
    row = lax.broadcasted_iota(jnp.int32, (T, T), 0)
    col = lax.broadcasted_iota(jnp.int32, (T, T), 1)
    causal = (row >= col)[None]                        # (1, T, T) broadcast over batch block

    # Static unroll over heads (H is small); each head's scores/probs are batched over the
    # Bt batch rows with one leading batch dim, and its output is retired into VMEM scratch
    # so only one head's (Bt, T, T) slab is meaningfully live at a time.
    # TODO(synk): for large H, move heads onto a grid axis or use a head-major relayout +
    #             single batched dot to remove the 3*H lane-narrow slices below.
    for h in range(H):
        q = qkv_c[:, h * HS:(h + 1) * HS].reshape(Bt, T, HS)          # already * C**-0.5
        k = qkv_c[:, C + h * HS:C + (h + 1) * HS].reshape(Bt, T, HS)
        v = qkv_c[:, 2 * C + h * HS:2 * C + (h + 1) * HS].reshape(Bt, T, HS)

        # q @ k^T batched over the batch block (no k transpose materialized).
        s = jnp.einsum('bqd,bkd->bqk', q, k,
                       preferred_element_type=jnp.float32)            # (Bt, T, T) f32

        # Large negative instead of -inf: robust even if a row were fully masked.
        s = jnp.where(causal, s, -1e30)

        # Numerically-stable softmax, kept in f32 (v5e has no bf16 VPU/EUP path).
        s = s - jnp.max(s, axis=-1, keepdims=True)
        p = jnp.exp(s)
        p = p * pl.reciprocal(jnp.sum(p, axis=-1, keepdims=True), approx=True)

        o = jnp.einsum('bqk,bkd->bqd', p.astype(qkv_c.dtype), v,
                       preferred_element_type=jnp.float32)             # (Bt, T, HS) f32

        # torch.cat(..., dim=-1): head h owns lanes h*HS:(h+1)*HS of the concat buffer.
        att_ref[:, h * HS:(h + 1) * HS] = o.reshape(N, HS)

    # Output projection fused in: one (N, C) x (C, C) MXU push, f32 accumulate + bias.
    wp = wp_ref[...]                                   # (C, C) = W_proj^T, compute dtype
    y = jnp.dot(att_ref[...].astype(wp.dtype), wp,
                preferred_element_type=jnp.float32) + bp_ref[...]      # (N, C) f32
    out_ref[...] = y.reshape(Bt, T, C).astype(out_ref.dtype)           # lane-dense (Bt,T,C) store


# ---------------------------------------------------------------------------
# Batch-block size: biggest divisor of B that fits a conservative VMEM budget,
# targeting Bt*T >= 256 rows (fills the v6e/v7x MXU; a 256-row tile also fully
# feeds v5e's 128-wide MXU). Keeps >=2 grid steps for the v7x megacore when
# that doesn't starve the MXU.
# ---------------------------------------------------------------------------
def _pick_batch_block(B, T, C, in_itemsize):
    budget = 20 * 2 ** 20
    best = 1
    for bt in range(1, B + 1):
        if B % bt:
            continue
        n = bt * T
        ws = (n * C * in_itemsize        # x tile
              + n * 3 * C * 4            # qkv f32 slab
              + 2 * n * C * 4            # att scratch + projected output
              + 3 * bt * T * T * 4)      # scores / probs live per head
        if ws > budget:
            break
        best = bt
        if n >= 256:
            break
    # Prefer >=2 parallel grid points (v7x megacore) if halving keeps >=256 rows per step.
    if B // best == 1 and best % 2 == 0 and (best // 2) * T >= 256:
        best //= 2
    return best


# ---------------------------------------------------------------------------
# Wrapper: pack weights, pick batch block, build grid spec, call the fused kernel.
# ---------------------------------------------------------------------------
def gpt_multihead_attention(x, params, *, compute_dtype=jnp.bfloat16, batch_block=None):
    """x: (B, T, C). params: wq/wk/wv (H, C, HS), wp_t (C, C)=W_proj^T, bp (1, C).
    Returns (B, T, C) float32. compute_dtype (default bf16) sets the MXU operand dtype;
    softmax and all matmul accumulation stay f32."""
    wq, wk, wv = params["wq"], params["wk"], params["wv"]
    wp_t, bp = params["wp_t"], params["bp"]

    B, T, C = x.shape
    H, _, HS = wq.shape
    assert H * HS == C, "num_heads * head_size must equal num_embed"

    # Pack per-head weights into one (C, 3C) operand; head h = columns h*HS:(h+1)*HS.
    # NOTE: scale is C**-0.5 (num_embed, NOT head_size) to match the PyTorch source exactly.
    scale = C ** -0.5
    wq_p = jnp.transpose(wq, (1, 0, 2)).reshape(C, H * HS) * scale
    wk_p = jnp.transpose(wk, (1, 0, 2)).reshape(C, H * HS)
    wv_p = jnp.transpose(wv, (1, 0, 2)).reshape(C, H * HS)
    wqkv = jnp.concatenate([wq_p, wk_p, wv_p], axis=1)                 # (C, 3C)

    x_c = x.astype(compute_dtype)
    wqkv_c = wqkv.astype(compute_dtype)
    wp_c = wp_t.astype(compute_dtype)
    bp_f32 = bp.astype(jnp.float32)

    itemsize = jnp.dtype(compute_dtype).itemsize
    if batch_block is None:
        batch_block = _pick_batch_block(B, T, C, itemsize)
    Bt = batch_block
    assert B % Bt == 0, "batch_block must divide B"
    grid_b = B // Bt
    N = Bt * T

    kernel = functools.partial(fused_mha_kernel, num_heads=H, head_size=HS,
                               batch_block=Bt, seq_len=T)

    # Advisory cost estimate for XLA's scheduler (weights counted once; intra-step
    # (T,T) traffic ignored — advisory only).
    flops = int(2 * B * T * C * 3 * C + 4 * B * H * T * T * HS + 2 * B * T * C * C)
    bytes_accessed = int(x_c.size * itemsize + wqkv_c.size * itemsize
                         + wp_c.size * itemsize + bp_f32.size * 4 + B * T * C * 4)
    cost = pl.CostEstimate(flops=flops, transcendentals=int(B * H * T * T),
                           bytes_accessed=bytes_accessed)

    # Scoped-VMEM limit from the actual working set (+2x headroom); v5e's 16 MiB default
    # is the first one to bite, but the same knob helps v6e/v7x at large T/C.
    ws = (2 * N * C * itemsize            # x blocks (double-buffered)
          + 2 * N * C * 4                 # out blocks (double-buffered, f32)
          + 2 * 3 * C * C * itemsize      # Wqkv (double-buffered constant)
          + 2 * C * C * itemsize          # Wproj
          + N * 3 * C * 4                 # qkv f32 slab
          + N * C * 4                     # head-output scratch
          + 3 * Bt * T * T * 4)           # scores/probs per head
    vmem_limit = int(min(max(2 * ws, 32 * 2 ** 20), 100 * 2 ** 20))

    return pl.pallas_call(
        kernel,
        out_shape=jax.ShapeDtypeStruct((B, T, C), jnp.float32),
        grid_spec=pltpu.PrefetchScalarGridSpec(
            num_scalar_prefetch=0,
            grid=(grid_b,),                                  # parallel batch-block axis
            in_specs=[
                pl.BlockSpec((Bt, T, C), lambda b: (b, 0, 0)),     # x       — per-block tile
                pl.BlockSpec((C, 3 * C), lambda b: (0, 0)),        # Wqkv    — shared constant
                pl.BlockSpec((C, C), lambda b: (0, 0)),            # Wproj^T — shared constant
                pl.BlockSpec((1, C), lambda b: (0, 0)),            # bias    — shared constant
            ],
            out_specs=pl.BlockSpec((Bt, T, C), lambda b: (b, 0, 0)),
            scratch_shapes=[pltpu.VMEM((N, C), jnp.float32)],      # head-output concat buffer
        ),
        compiler_params=pltpu.CompilerParams(
            dimension_semantics=("parallel",),
            vmem_limit_bytes=vmem_limit),
        cost_estimate=cost,
    )(x_c, wqkv_c, wp_c, bp_f32)


# ---------------------------------------------------------------------------
# Pure-JAX reference (same math as the PyTorch module, no Pallas).
# ---------------------------------------------------------------------------
def reference_forward(x, params):
    B, T, C = x.shape
    tril = jnp.tril(jnp.ones((T, T), dtype=jnp.float32))
    outs = []
    for h in range(params["wq"].shape[0]):
        q = x @ params["wq"][h]
        k = x @ params["wk"][h]
        v = x @ params["wv"][h]
        wei = (q @ jnp.swapaxes(k, -2, -1)) * (C ** -0.5)
        wei = jnp.where(tril == 0, -jnp.inf, wei)
        wei = jax.nn.softmax(wei, axis=-1)
        outs.append(wei @ v)
    cat = jnp.concatenate(outs, axis=-1)
    return cat @ params["wp_t"] + params["bp"]


if __name__ == "__main__":
    # Small shapes consistent with the module.
    B, T = 2, 8                          # batch, sequence (== block_size)
    num_heads, head_size = 4, 8
    num_embed = num_heads * head_size    # 32, so proj(num_embed, num_embed) lines up

    key = jax.random.PRNGKey(0)
    kx, kq, kk, kv, kp, kb = jax.random.split(key, 6)

    x = jax.random.normal(kx, (B, T, num_embed), dtype=jnp.float32)

    params = {
        "wq": 0.02 * jax.random.normal(kq, (num_heads, num_embed, head_size), jnp.float32),
        "wk": 0.02 * jax.random.normal(kk, (num_heads, num_embed, head_size), jnp.float32),
        "wv": 0.02 * jax.random.normal(kv, (num_heads, num_embed, head_size), jnp.float32),
        "wp_t": 0.02 * jax.random.normal(kp, (num_embed, num_embed), jnp.float32),
        "bp": 0.02 * jax.random.normal(kb, (1, num_embed), jnp.float32),
    }

    ref = reference_forward(x, params)

    # Default bf16 MXU-operand path (native MXU dtype on all generations), f32 softmax/accumulate.
    out_bf16 = jax.block_until_ready(gpt_multihead_attention(x, params))
    assert out_bf16.shape == (B, T, num_embed)
    assert jnp.allclose(out_bf16, ref, atol=1e-2, rtol=5e-2), "bf16 path mismatch"

    # f32 operand path (exact-ish; only the approx reciprocal in the softmax differs).
    out_f32 = jax.block_until_ready(
        gpt_multihead_attention(x, params, compute_dtype=jnp.float32))
    assert out_f32.shape == (B, T, num_embed)
    assert jnp.allclose(out_f32, ref, atol=2e-4, rtol=2e-3), "f32 path mismatch"

    print("KERNEL_OK")
</pallas_src>

<mosaic_0001>
module attributes {stable_mosaic.version = 11 : i64} {
  func.func @fused_mha_kernel(%arg0: i32, %arg1: memref<2x8x32xbf16, #tpu.memory_space<vmem>>, %arg2: memref<32x96xbf16, #tpu.memory_space<vmem>>, %arg3: memref<32x32xbf16, #tpu.memory_space<vmem>>, %arg4: memref<1x32xf32, #tpu.memory_space<vmem>>, %arg5: memref<2x8x32xf32, #tpu.memory_space<vmem>>, %arg6: memref<16x32xf32, #tpu.memory_space<vmem>>) attributes {dimension_semantics = [#tpu.dimension_semantics<parallel>], iteration_bounds = array<i64: 1>, scalar_prefetch = 0 : i64, scratch_operands = 1 : i64, tpu.core_type = #tpu.core_type<tc>, window_params = [{transform_indices = @transform_0, window_bounds = array<i64: 2, 8, 32>}, {pipeline_mode = #tpu.pipeline_mode<synchronous>, transform_indices = @transform_1, window_bounds = array<i64: 32, 96>}, {pipeline_mode = #tpu.pipeline_mode<synchronous>, transform_indices = @transform_2, window_bounds = array<i64: 32, 32>}, {pipeline_mode = #tpu.pipeline_mode<synchronous>, transform_indices = @transform_3, window_bounds = array<i64: 1, 32>}, {transform_indices = @transform_4, window_bounds = array<i64: 2, 8, 32>}]} {
    %c0 = arith.constant 0 : index
    %c0_0 = arith.constant 0 : index
    %c0_1 = arith.constant 0 : index
    %0 = vector.load %arg1[%c0, %c0_0, %c0_1] : memref<2x8x32xbf16, #tpu.memory_space<vmem>>, vector<2x8x32xbf16>
    %1 = vector.shape_cast %0 : vector<2x8x32xbf16> to vector<16x32xbf16>
    %c0_2 = arith.constant 0 : index
    %c0_3 = arith.constant 0 : index
    %2 = vector.load %arg2[%c0_2, %c0_3] : memref<32x96xbf16, #tpu.memory_space<vmem>>, vector<32x96xbf16>
    %cst = arith.constant dense<0.000000e+00> : vector<16x96xf32>
    %3 = tpu.matmul %1, %2, %cst {dimension_numbers = #tpu.dot_dimension_numbers<[1], [0], [0], [1], [0, 0, 1, 1], [], []>} : vector<16x32xbf16>, vector<32x96xbf16>, vector<16x96xf32> -> vector<16x96xf32>
    %4 = arith.truncf %3 : vector<16x96xf32> to vector<16x96xbf16>
    %5 = tpu.iota {dimensions = array<i32: 0>} : vector<8x8xi32>
    %6 = tpu.iota {dimensions = array<i32: 1>} : vector<8x8xi32>
    %7 = arith.cmpi sge, %5, %6 : vector<8x8xi32>
    %8 = vector.shape_cast %7 : vector<8x8xi1> to vector<1x8x8xi1>
    %9 = vector.extract_strided_slice %4 {offsets = [0, 0], sizes = [16, 8], strides = [1, 1]} : vector<16x96xbf16> to vector<16x8xbf16>
    %10 = vector.shape_cast %9 : vector<16x8xbf16> to vector<2x8x8xbf16>
    %11 = vector.extract_strided_slice %4 {offsets = [0, 32], sizes = [16, 8], strides = [1, 1]} : vector<16x96xbf16> to vector<16x8xbf16>
    %12 = vector.shape_cast %11 : vector<16x8xbf16> to vector<2x8x8xbf16>
    %13 = vector.extract_strided_slice %4 {offsets = [0, 64], sizes = [16, 8], strides = [1, 1]} : vector<16x96xbf16> to vector<16x8xbf16>
    %14 = vector.shape_cast %13 : vector<16x8xbf16> to vector<2x8x8xbf16>
    "tpu.trace_start"() <{level = 10 : i32, message = "bqd,bkd->bqk"}> : () -> ()
    %cst_4 = arith.constant dense<0.000000e+00> : vector<2x8x8xf32>
    %15 = tpu.matmul %10, %12, %cst_4 {dimension_numbers = #tpu.dot_dimension_numbers<[2], [2], [1], [1], [0, 0, 0, 1, 1, 1], [0], [0]>} : vector<2x8x8xbf16>, vector<2x8x8xbf16>, vector<2x8x8xf32> -> vector<2x8x8xf32>
    %cst_5 = arith.constant -1.000000e+30 : f32
    "tpu.trace_stop"() : () -> ()
    %16 = vector.shape_cast %8 : vector<1x8x8xi1> to vector<1x8x8xi1>
    %17 = vector.broadcast %16 : vector<1x8x8xi1> to vector<2x8x8xi1>
    %18 = vector.broadcast %cst_5 : f32 to vector<2x8x8xf32>
    %19 = arith.select %17, %15, %18 : vector<2x8x8xi1>, vector<2x8x8xf32>
    %cst_6 = arith.constant dense<0xFF800000> : vector<2x8xf32>
    %20 = vector.multi_reduction <maximumf>, %19, %cst_6 [2] : vector<2x8x8xf32> to vector<2x8xf32>
    %21 = vector.shape_cast %20 : vector<2x8xf32> to vector<2x8x1xf32>
    %22 = vector.broadcast %21 : vector<2x8x1xf32> to vector<2x8x8xf32>
    %23 = arith.subf %19, %22 : vector<2x8x8xf32>
    %24 = math.exp %23 : vector<2x8x8xf32>
    %cst_7 = arith.constant dense<0.000000e+00> : vector<2x8xf32>
    %25 = vector.multi_reduction <add>, %24, %cst_7 [2] : vector<2x8x8xf32> to vector<2x8xf32>
    %26 = vector.shape_cast %25 : vector<2x8xf32> to vector<2x8x1xf32>
    %27 = tpu.reciprocal %26 {approx = true} : vector<2x8x1xf32> -> vector<2x8x1xf32>
    %28 = vector.broadcast %27 : vector<2x8x1xf32> to vector<2x8x8xf32>
    %29 = arith.mulf %24, %28 : vector<2x8x8xf32>
    %30 = arith.truncf %29 : vector<2x8x8xf32> to vector<2x8x8xbf16>
    "tpu.trace_start"() <{level = 10 : i32, message = "bqk,bkd->bqd"}> : () -> ()
    %cst_8 = arith.constant dense<0.000000e+00> : vector<2x8x8xf32>
    %31 = tpu.matmul %30, %14, %cst_8 {dimension_numbers = #tpu.dot_dimension_numbers<[2], [1], [1], [2], [0, 0, 0, 1, 1, 2], [0], [0]>} : vector<2x8x8xbf16>, vector<2x8x8xbf16>, vector<2x8x8xf32> -> vector<2x8x8xf32>
    "tpu.trace_stop"() : () -> ()
    %32 = vector.shape_cast %31 : vector<2x8x8xf32> to vector<16x8xf32>
    %c0_9 = arith.constant 0 : index
    %c0_10 = arith.constant 0 : index
    %33 = vector.load %arg6[%c0_9, %c0_10] : memref<16x32xf32, #tpu.memory_space<vmem>>, vector<16x8xf32>
    tpu.vector_store %arg6[%c0_9, %c0_10], %32 {strides = array<i32>} : memref<16x32xf32, #tpu.memory_space<vmem>>, vector<16x8xf32>,
    %34 = vector.extract_strided_slice %4 {offsets = [0, 8], sizes = [16, 8], strides = [1, 1]} : vector<16x96xbf16> to vector<16x8xbf16>
    %35 = vector.shape_cast %34 : vector<16x8xbf16> to vector<2x8x8xbf16>
    %36 = vector.extract_strided_slice %4 {offsets = [0, 40], sizes = [16, 8], strides = [1, 1]} : vector<16x96xbf16> to vector<16x8xbf16>
    %37 = vector.shape_cast %36 : vector<16x8xbf16> to vector<2x8x8xbf16>
    %38 = vector.extract_strided_slice %4 {offsets = [0, 72], sizes = [16, 8], strides = [1, 1]} : vector<16x96xbf16> to vector<16x8xbf16>
    %39 = vector.shape_cast %38 : vector<16x8xbf16> to vector<2x8x8xbf16>
    "tpu.trace_start"() <{level = 10 : i32, message = "bqd,bkd->bqk"}> : () -> ()
    %cst_11 = arith.constant dense<0.000000e+00> : vector<2x8x8xf32>
    %40 = tpu.matmul %35, %37, %cst_11 {dimension_numbers = #tpu.dot_dimension_numbers<[2], [2], [1], [1], [0, 0, 0, 1, 1, 1], [0], [0]>} : vector<2x8x8xbf16>, vector<2x8x8xbf16>, vector<2x8x8xf32> -> vector<2x8x8xf32>
    %cst_12 = arith.constant -1.000000e+30 : f32
    "tpu.trace_stop"() : () -> ()
    %41 = vector.shape_cast %8 : vector<1x8x8xi1> to vector<1x8x8xi1>
    %42 = vector.broadcast %41 : vector<1x8x8xi1> to vector<2x8x8xi1>
    %43 = vector.broadcast %cst_12 : f32 to vector<2x8x8xf32>
    %44 = arith.select %42, %40, %43 : vector<2x8x8xi1>, vector<2x8x8xf32>
    %cst_13 = arith.constant dense<0xFF800000> : vector<2x8xf32>
    %45 = vector.multi_reduction <maximumf>, %44, %cst_13 [2] : vector<2x8x8xf32> to vector<2x8xf32>
    %46 = vector.shape_cast %45 : vector<2x8xf32> to vector<2x8x1xf32>
    %47 = vector.broadcast %46 : vector<2x8x1xf32> to vector<2x8x8xf32>
    %48 = arith.subf %44, %47 : vector<2x8x8xf32>
    %49 = math.exp %48 : vector<2x8x8xf32>
    %cst_14 = arith.constant dense<0.000000e+00> : vector<2x8xf32>
    %50 = vector.multi_reduction <add>, %49, %cst_14 [2] : vector<2x8x8xf32> to vector<2x8xf32>
    %51 = vector.shape_cast %50 : vector<2x8xf32> to vector<2x8x1xf32>
    %52 = tpu.reciprocal %51 {approx = true} : vector<2x8x1xf32> -> vector<2x8x1xf32>
    %53 = vector.broadcast %52 : vector<2x8x1xf32> to vector<2x8x8xf32>
    %54 = arith.mulf %49, %53 : vector<2x8x8xf32>
    %55 = arith.truncf %54 : vector<2x8x8xf32> to vector<2x8x8xbf16>
    "tpu.trace_start"() <{level = 10 : i32, message = "bqk,bkd->bqd"}> : () -> ()
    %cst_15 = arith.constant dense<0.000000e+00> : vector<2x8x8xf32>
    %56 = tpu.matmul %55, %39, %cst_15 {dimension_numbers = #tpu.dot_dimension_numbers<[2], [1], [1], [2], [0, 0, 0, 1, 1, 2], [0], [0]>} : vector<2x8x8xbf16>, vector<2x8x8xbf16>, vector<2x8x8xf32> -> vector<2x8x8xf32>
    "tpu.trace_stop"() : () -> ()
    %57 = vector.shape_cast %56 : vector<2x8x8xf32> to vector<16x8xf32>
    %c0_16 = arith.constant 0 : index
    %c8 = arith.constant 8 : index
    %58 = vector.load %arg6[%c0_16, %c8] : memref<16x32xf32, #tpu.memory_space<vmem>>, vector<16x8xf32>
    tpu.vector_store %arg6[%c0_16, %c8], %57 {strides = array<i32>} : memref<16x32xf32, #tpu.memory_space<vmem>>, vector<16x8xf32>,
    %59 = vector.extract_strided_slice %4 {offsets = [0, 16], sizes = [16, 8], strides = [1, 1]} : vector<16x96xbf16> to vector<16x8xbf16>
    %60 = vector.shape_cast %59 : vector<16x8xbf16> to vector<2x8x8xbf16>
    %61 = vector.extract_strided_slice %4 {offsets = [0, 48], sizes = [16, 8], strides = [1, 1]} : vector<16x96xbf16> to vector<16x8xbf16>
    %62 = vector.shape_cast %61 : vector<16x8xbf16> to vector<2x8x8xbf16>
    %63 = vector.extract_strided_slice %4 {offsets = [0, 80], sizes = [16, 8], strides = [1, 1]} : vector<16x96xbf16> to vector<16x8xbf16>
    %64 = vector.shape_cast %63 : vector<16x8xbf16> to vector<2x8x8xbf16>
    "tpu.trace_start"() <{level = 10 : i32, message = "bqd,bkd->bqk"}> : () -> ()
    %cst_17 = arith.constant dense<0.000000e+00> : vector<2x8x8xf32>
    %65 = tpu.matmul %60, %62, %cst_17 {dimension_numbers = #tpu.dot_dimension_numbers<[2], [2], [1], [1], [0, 0, 0, 1, 1, 1], [0], [0]>} : vector<2x8x8xbf16>, vector<2x8x8xbf16>, vector<2x8x8xf32> -> vector<2x8x8xf32>
    %cst_18 = arith.constant -1.000000e+30 : f32
    "tpu.trace_stop"() : () -> ()
    %66 = vector.shape_cast %8 : vector<1x8x8xi1> to vector<1x8x8xi1>
    %67 = vector.broadcast %66 : vector<1x8x8xi1> to vector<2x8x8xi1>
    %68 = vector.broadcast %cst_18 : f32 to vector<2x8x8xf32>
    %69 = arith.select %67, %65, %68 : vector<2x8x8xi1>, vector<2x8x8xf32>
    %cst_19 = arith.constant dense<0xFF800000> : vector<2x8xf32>
    %70 = vector.multi_reduction <maximumf>, %69, %cst_19 [2] : vector<2x8x8xf32> to vector<2x8xf32>
    %71 = vector.shape_cast %70 : vector<2x8xf32> to vector<2x8x1xf32>
    %72 = vector.broadcast %71 : vector<2x8x1xf32> to vector<2x8x8xf32>
    %73 = arith.subf %69, %72 : vector<2x8x8xf32>
    %74 = math.exp %73 : vector<2x8x8xf32>
    %cst_20 = arith.constant dense<0.000000e+00> : vector<2x8xf32>
    %75 = vector.multi_reduction <add>, %74, %cst_20 [2] : vector<2x8x8xf32> to vector<2x8xf32>
    %76 = vector.shape_cast %75 : vector<2x8xf32> to vector<2x8x1xf32>
    %77 = tpu.reciprocal %76 {approx = true} : vector<2x8x1xf32> -> vector<2x8x1xf32>
    %78 = vector.broadcast %77 : vector<2x8x1xf32> to vector<2x8x8xf32>
    %79 = arith.mulf %74, %78 : vector<2x8x8xf32>
    %80 = arith.truncf %79 : vector<2x8x8xf32> to vector<2x8x8xbf16>
    "tpu.trace_start"() <{level = 10 : i32, message = "bqk,bkd->bqd"}> : () -> ()
    %cst_21 = arith.constant dense<0.000000e+00> : vector<2x8x8xf32>
    %81 = tpu.matmul %80, %64, %cst_21 {dimension_numbers = #tpu.dot_dimension_numbers<[2], [1], [1], [2], [0, 0, 0, 1, 1, 2], [0], [0]>} : vector<2x8x8xbf16>, vector<2x8x8xbf16>, vector<2x8x8xf32> -> vector<2x8x8xf32>
    "tpu.trace_stop"() : () -> ()
    %82 = vector.shape_cast %81 : vector<2x8x8xf32> to vector<16x8xf32>
    %c0_22 = arith.constant 0 : index
    %c16 = arith.constant 16 : index
    %83 = vector.load %arg6[%c0_22, %c16] : memref<16x32xf32, #tpu.memory_space<vmem>>, vector<16x8xf32>
    tpu.vector_store %arg6[%c0_22, %c16], %82 {strides = array<i32>} : memref<16x32xf32, #tpu.memory_space<vmem>>, vector<16x8xf32>,
    %84 = vector.extract_strided_slice %4 {offsets = [0, 24], sizes = [16, 8], strides = [1, 1]} : vector<16x96xbf16> to vector<16x8xbf16>
    %85 = vector.shape_cast %84 : vector<16x8xbf16> to vector<2x8x8xbf16>
    %86 = vector.extract_strided_slice %4 {offsets = [0, 56], sizes = [16, 8], strides = [1, 1]} : vector<16x96xbf16> to vector<16x8xbf16>
    %87 = vector.shape_cast %86 : vector<16x8xbf16> to vector<2x8x8xbf16>
    %88 = vector.extract_strided_slice %4 {offsets = [0, 88], sizes = [16, 8], strides = [1, 1]} : vector<16x96xbf16> to vector<16x8xbf16>
    %89 = vector.shape_cast %88 : vector<16x8xbf16> to vector<2x8x8xbf16>
    "tpu.trace_start"() <{level = 10 : i32, message = "bqd,bkd->bqk"}> : () -> ()
    %cst_23 = arith.constant dense<0.000000e+00> : vector<2x8x8xf32>
    %90 = tpu.matmul %85, %87, %cst_23 {dimension_numbers = #tpu.dot_dimension_numbers<[2], [2], [1], [1], [0, 0, 0, 1, 1, 1], [0], [0]>} : vector<2x8x8xbf16>, vector<2x8x8xbf16>, vector<2x8x8xf32> -> vector<2x8x8xf32>
    %cst_24 = arith.constant -1.000000e+30 : f32
    "tpu.trace_stop"() : () -> ()
    %91 = vector.shape_cast %8 : vector<1x8x8xi1> to vector<1x8x8xi1>
    %92 = vector.broadcast %91 : vector<1x8x8xi1> to vector<2x8x8xi1>
    %93 = vector.broadcast %cst_24 : f32 to vector<2x8x8xf32>
    %94 = arith.select %92, %90, %93 : vector<2x8x8xi1>, vector<2x8x8xf32>
    %cst_25 = arith.constant dense<0xFF800000> : vector<2x8xf32>
    %95 = vector.multi_reduction <maximumf>, %94, %cst_25 [2] : vector<2x8x8xf32> to vector<2x8xf32>
    %96 = vector.shape_cast %95 : vector<2x8xf32> to vector<2x8x1xf32>
    %97 = vector.broadcast %96 : vector<2x8x1xf32> to vector<2x8x8xf32>
    %98 = arith.subf %94, %97 : vector<2x8x8xf32>
    %99 = math.exp %98 : vector<2x8x8xf32>
    %cst_26 = arith.constant dense<0.000000e+00> : vector<2x8xf32>
    %100 = vector.multi_reduction <add>, %99, %cst_26 [2] : vector<2x8x8xf32> to vector<2x8xf32>
    %101 = vector.shape_cast %100 : vector<2x8xf32> to vector<2x8x1xf32>
    %102 = tpu.reciprocal %101 {approx = true} : vector<2x8x1xf32> -> vector<2x8x1xf32>
    %103 = vector.broadcast %102 : vector<2x8x1xf32> to vector<2x8x8xf32>
    %104 = arith.mulf %99, %103 : vector<2x8x8xf32>
    %105 = arith.truncf %104 : vector<2x8x8xf32> to vector<2x8x8xbf16>
    "tpu.trace_start"() <{level = 10 : i32, message = "bqk,bkd->bqd"}> : () -> ()
    %cst_27 = arith.constant dense<0.000000e+00> : vector<2x8x8xf32>
    %106 = tpu.matmul %105, %89, %cst_27 {dimension_numbers = #tpu.dot_dimension_numbers<[2], [1], [1], [2], [0, 0, 0, 1, 1, 2], [0], [0]>} : vector<2x8x8xbf16>, vector<2x8x8xbf16>, vector<2x8x8xf32> -> vector<2x8x8xf32>
    "tpu.trace_stop"() : () -> ()
    %107 = vector.shape_cast %106 : vector<2x8x8xf32> to vector<16x8xf32>
    %c0_28 = arith.constant 0 : index
    %c24 = arith.constant 24 : index
    %108 = vector.load %arg6[%c0_28, %c24] : memref<16x32xf32, #tpu.memory_space<vmem>>, vector<16x8xf32>
    tpu.vector_store %arg6[%c0_28, %c24], %107 {strides = array<i32>} : memref<16x32xf32, #tpu.memory_space<vmem>>, vector<16x8xf32>,
    %c0_29 = arith.constant 0 : index
    %c0_30 = arith.constant 0 : index
    %109 = vector.load %arg3[%c0_29, %c0_30] : memref<32x32xbf16, #tpu.memory_space<vmem>>, vector<32x32xbf16>
    %c0_31 = arith.constant 0 : index
    %c0_32 = arith.constant 0 : index
    %110 = vector.load %arg6[%c0_31, %c0_32] : memref<16x32xf32, #tpu.memory_space<vmem>>, vector<16x32xf32>
    %111 = arith.truncf %110 : vector<16x32xf32> to vector<16x32xbf16>
    %cst_33 = arith.constant dense<0.000000e+00> : vector<16x32xf32>
    %112 = tpu.matmul %111, %109, %cst_33 {dimension_numbers = #tpu.dot_dimension_numbers<[1], [0], [0], [1], [0, 0, 1, 1], [], []>} : vector<16x32xbf16>, vector<32x32xbf16>, vector<16x32xf32> -> vector<16x32xf32>
    %c0_34 = arith.constant 0 : index
    %c0_35 = arith.constant 0 : index
    %113 = vector.load %arg4[%c0_34, %c0_35] : memref<1x32xf32, #tpu.memory_space<vmem>>, vector<1x32xf32>
    %114 = vector.broadcast %113 : vector<1x32xf32> to vector<16x32xf32>
    %115 = arith.addf %112, %114 : vector<16x32xf32>
    %116 = vector.shape_cast %115 : vector<16x32xf32> to vector<2x8x32xf32>
    %c0_36 = arith.constant 0 : index
    %c0_37 = arith.constant 0 : index
    %c0_38 = arith.constant 0 : index
    %117 = vector.load %arg5[%c0_36, %c0_37, %c0_38] : memref<2x8x32xf32, #tpu.memory_space<vmem>>, vector<2x8x32xf32>
    tpu.vector_store %arg5[%c0_36, %c0_37, %c0_38], %116 {strides = array<i32>} : memref<2x8x32xf32, #tpu.memory_space<vmem>>, vector<2x8x32xf32>,
    return
  }
  func.func @transform_0(%arg0: i32) -> (i32, i32, i32) {
    %c0_i32 = arith.constant 0 : i32
    %c0_i32_0 = arith.constant 0 : i32
    %c0_i32_1 = arith.constant 0 : i32
    return %arg0, %c0_i32, %c0_i32_0 : i32, i32, i32
  }
  func.func @transform_1(%arg0: i32) -> (i32, i32) {
    %c0_i32 = arith.constant 0 : i32
    %c0_i32_0 = arith.constant 0 : i32
    %c0_i32_1 = arith.constant 0 : i32
    return %c0_i32, %c0_i32_0 : i32, i32
  }
  func.func @transform_2(%arg0: i32) -> (i32, i32) {
    %c0_i32 = arith.constant 0 : i32
    %c0_i32_0 = arith.constant 0 : i32
    %c0_i32_1 = arith.constant 0 : i32
    return %c0_i32, %c0_i32_0 : i32, i32
  }
  func.func @transform_3(%arg0: i32) -> (i32, i32) {
    %c0_i32 = arith.constant 0 : i32
    %c0_i32_0 = arith.constant 0 : i32
    %c0_i32_1 = arith.constant 0 : i32
    return %c0_i32, %c0_i32_0 : i32, i32
  }
  func.func @transform_4(%arg0: i32) -> (i32, i32, i32) {
    %c0_i32 = arith.constant 0 : i32
    %c0_i32_0 = arith.constant 0 : i32
    %c0_i32_1 = arith.constant 0 : i32
    return %arg0, %c0_i32, %c0_i32_0 : i32, i32, i32
  }
}

</mosaic_0001>

<bundles_post_ra>
// kernel: tpu_custom_call.1
= control target key start
LH: loop header
LB: loop body
LE: loop exit
PB: predicated region body
PF: predicated region fallthrough
CT: control target
= control target key end

     0   :  { %9 = vsyncpa [#allocation4], 0  ;;  %s1770_s0 = inlined_call_operand.hbm [shape: bf16[2,8,32], index: 0, kind: input, shape index: {}]   ;;  %s1771_s1 = inlined_call_operand.hbm [shape: bf16[32,96], index: 1, kind: input, shape index: {}]   ;;  %s1772_s2 = inlined_call_operand.hbm [shape: bf16[32,32], index: 2, kind: input, shape index: {}]   ;;  %s1773_s3 = inlined_call_operand.vmem [shape: f32[1,32], index: 3, kind: input, shape index: {}]   ;;  %s1774_s4 = inlined_call_operand.hbm [shape: f32[2,8,32], index: 4, kind: output, shape index: {}]  }
   0x1   :  { %10 = vsyncpa [#allocation7], 0 }
   0x2   :  { %11 = vsyncpa [#allocation5], 0  ;;  %s1483_s15 = smov [#allocation6]   ;;  %s1484_s17 = smov [#allocation3]  }
   0x3   :  { %s29_s16 = sshll.u32 %s1483_s15, 4  ;;  %s17_s18 = sshll.u32 %s1484_s17, 4  ;;  %s30_s16 = int_to_ptr.vmem [resolvable:$true] %s29_s16  ;;  %s1530_s18 = int_to_ptr.vmem [resolvable:$true] %s17_s18 }
   0x4   :  { %s1389_s21 = scalar_lea.hbm %s1771_s1, 256 }
   0x5   :  { %p1390_p0 = scmp.ne.s32.totalorder %s1771_s1, %s1389_s21  ;;  %p1393_p1 = scmp.lt.u32.totalorder %s1389_s21, %s1771_s1 }
   0x7   :  { %p1395_p2 = pnand %p1393_p1, %p1390_p0 }
   0x9   :  { %1398 = shalt.err (!%p1395_p2)
}
   0xa   :  { %s1399_s26 = scalar_lea.vmem %s30_s16, 256  ;;  %p1404_p4 = scmp.lt.s32.totalorder %s30_s16, %s30_s16 }
   0xb   :  { %p1400_p3 = scmp.ne.s32.totalorder %s30_s16, %s1399_s26  ;;  %p1405_p5 = scmp.lt.s32.totalorder %s1399_s26, %s1399_s26 }
   0xd   :  { %p1406_p6 = por %p1405_p5, %p1404_p4 }
   0xf   :  { %p1407_p7 = pnand %p1406_p6, %p1400_p3 }
  0x11   :  { %1410 = shalt.err (!%p1407_p7)
}
  0x12   :  { %s1485_s27 = smov 64   ;;  %s1486_s28 = smov 4  }
  0x13   :  { %35 = dma.hbm_to_vmem [thread:$0]  %s1771_s1, 256, %s30_s16, [#allocation7], %s1485_s27, %s1485_s27, %s1486_s28  }
  0x14   :  { %s1411_s7 = scalar_lea.hbm %s1770_s0, 128 }
  0x15   :  { %p1412_p8 = scmp.ne.s32.totalorder %s1770_s0, %s1411_s7  ;;  %p1415_p9 = scmp.lt.u32.totalorder %s1411_s7, %s1770_s0 }
  0x17   :  { %p1417_p10 = pnand %p1415_p9, %p1412_p8 }
  0x19   :  { %1420 = shalt.err (!%p1417_p10)
}
  0x1a   :  { %s1421_s12 = scalar_lea.vmem %s1530_s18, 128  ;;  %p1426_p12 = scmp.lt.s32.totalorder %s1530_s18, %s1530_s18 }
  0x1b   :  { %p1422_p11 = scmp.ne.s32.totalorder %s1530_s18, %s1421_s12  ;;  %p1427_p13 = scmp.lt.s32.totalorder %s1421_s12, %s1421_s12 }
  0x1d   :  { %p1428_p0 = por %p1427_p13, %p1426_p12 }
  0x1f   :  { %p1429_p1 = pnand %p1428_p0, %p1422_p11 }
  0x21   :  { %1432 = shalt.err (!%p1429_p1)
}
  0x22   :  { %23 = dma.hbm_to_vmem [thread:$0]  %s1770_s0, 128, %s1530_s18, [#allocation4], %s1485_s27, %s1485_s27, %s1486_s28  }
  0x23   :  { %s1487_s14 = smov [#allocation8]   ;;  %s1433_s19 = scalar_lea.hbm %s1772_s2, 256 }
  0x24   :  { %s41_s15 = sshll.u32 %s1487_s14, 4  ;;  %p1434_p2 = scmp.ne.s32.totalorder %s1772_s2, %s1433_s19  ;;  %s42_s15 = int_to_ptr.vmem [resolvable:$true] %s41_s15 }
  0x25   :  { %p1437_p3 = scmp.lt.u32.totalorder %s1433_s19, %s1772_s2 }
  0x27   :  { %p1439_p4 = pnand %p1437_p3, %p1434_p2 }
  0x29   :  { %1442 = shalt.err (!%p1439_p4)
}
  0x2a   :  { %s1443_s24 = scalar_lea.vmem %s42_s15, 256  ;;  %p1448_p6 = scmp.lt.s32.totalorder %s42_s15, %s42_s15 }
  0x2b   :  { %p1444_p5 = scmp.ne.s32.totalorder %s42_s15, %s1443_s24  ;;  %p1449_p7 = scmp.lt.s32.totalorder %s1443_s24, %s1443_s24 }
  0x2d   :  { %p1450_p8 = por %p1449_p7, %p1448_p6 }
  0x2f   :  { %p1451_p9 = pnand %p1450_p8, %p1444_p5 }
  0x31   :  { %1454 = shalt.err (!%p1451_p9)
}
  0x32   :  { %47 = dma.hbm_to_vmem [thread:$0]  %s1772_s2, 256, %s42_s15, [#allocation7], %s1485_s27, %s1485_s27, %s1486_s28  }
  0x33   :  { %1477 = dma.done.wait [#allocation4], 128  }
  0x34   :  { %1478 = vsyncadd [#allocation4], 4294967168 }
  0x35   :  { %1479 = dma.done.wait [#allocation7], 512  }
  0x36   :  { %1480 = vsyncadd [#allocation7], 4294966784  ;;  %v1488_v0 = vmov 0.0   ;;  %vm1489_vm0 = vmmov 0   ;;  %v1352_v1 = vld [vmem:[#allocation6] sm:$0xff]   ;;  %v1353_v2 = vld [vmem:[#allocation6 + $0x8] sm:$0xff]   ;;  %v129_v14 = vlaneseq }
  0x37   :  { %1218 = vmatprep.subr.bf16.mxu0 %v1488_v0  ;;  %1222 = vmatprep.mubr.msk.bf16.mxu0 %vm1489_vm0, %v1488_v0  ;;  %v1354_v3 = vld [vmem:[#allocation3] sm:$0xff]   ;;  %vm83_vm1 = vcmask 261120   ;;  %s1490_s2 = smov 96   ;;  %vm141_vm2 = vcmask 64512   ;;  %s1491_s25 = smov 88   ;;  %vm269_vm4 = vcmask 1043456  }
  0x38   :  { %1226 = vmatprep.subr.bf16.mxu1 %v1488_v0  ;;  %1228 = vmatprep.mubr.msk.bf16.mxu1 %vm1489_vm0, %v1488_v0  ;;  %v130_v15 = vshrl.u32 %v129_v14, 7  ;;  %v132_v16 = vand.u32 127, %v129_v14  ;;  %s1492_s26 = smov 120   ;;  %s1494_s28 = smov 80   ;;  %vm593_vm5 = vcmask 130112   ;;  %vm826_vm6 = vcmask 195712  }
  0x39   :  { %1219 = vmatpush3.bf16.msra.mxu0 %v1352_v1  ;;  %s1495_s29 = smov 112   ;;  %s1496_s30 = smov 48   ;;  %vm1059_vm7 = vcmask 261312  }
  0x3a   :  { %1220 = vmatprep.subr.bf16.mxu0 %v1488_v0  ;;  %vm1611_vm3 = vcmp.ge.s32.totalorder %v130_v15, %v132_v16  ;;  %s1497_s5 = smov 72   ;;  %s1498_s6 = smov 104  }
  0x3b   :  { %s1499_s7 = smov 40   ;;  %s1500_s8 = smov 8  }
  0x3c   :  { %s1501_s9 = smov 16   ;;  %s1502_s10 = smov 24  }
  0x3d   :  { %1221 = vmatpush3.bf16.msra.mxu0 %v1353_v2  ;;  %s1503_s1 = smov [#allocation9]  }
  0x3e   :  { %1232 = vmatprep.subr.bf16.mxu0 %v1488_v0  ;;  %s1139_s13 = sshll.u32 %s1503_s1, 4  ;;  %s1140_s13 = int_to_ptr.vmem [resolvable:$true] %s1139_s13 }
  0x3f   :  { %s1455_s14 = scalar_lea.vmem %s1140_s13, 256  ;;  %p1460_p11 = scmp.lt.s32.totalorder %s1140_s13, %s1140_s13 }
  0x40   :  { %1223 = vmatmul.mubr.msk.bf16.vlgmr.msra.gmra.mrb[0].mxu0 %vm83_vm1, %v1354_v3  ;;  %p1456_p10 = scmp.ne.s32.totalorder %s1140_s13, %s1455_s14  ;;  %p1461_p12 = scmp.lt.s32.totalorder %s1455_s14, %s1455_s14 }
  0x41   :  { %1234 = vmatprep.mubr.msk.bf16.mxu0 %vm1489_vm0, %v1488_v0 }
  0x42   :  { %p1462_p13 = por %p1461_p12, %p1460_p11 }
  0x44   :  { %p1463_p0 = pnand %p1462_p13, %p1456_p10 }
 0x113   :  { %v121_v4 = vpop.f32.mrb[0].mxu0 }
 0x114   :  { %v1593_v5 = vpack.c.bf16 %v121_v4, %v121_v4  ;;  %v1224_v6 = vpop.f32.mrb[1].mxu0 }
 0x115   :  { %v124_v7 = vpop.f32.mrb[2].mxu0 }
 0x116   :  { %139 = vrot.lane.b32.xlu0 %v1593_v5, %s1490_s2  ;;  %v1225_v8 = vpop.f32.mrb[3].mxu0  ;;  %v1596_v9 = vpack.c.bf16 %v124_v7, %v124_v7 }
 0x11a   :  { %188 = vrot.lane.b32.xlu0 %v1596_v9, %s1490_s2 }
 0x188   :  { %v140_v10 = vpop.permute.xlu0 %139 }
 0x189   :  { %v146_v11 = vsel %vm141_vm2, %v140_v10, 0 }
 0x18a   :  { %1227 = vmatpush3.bf16.xpose.msra.mxu1 %v146_v11 }
 0x18b   :  { %1238 = vmatprep.subr.bf16.mxu1 %v1488_v0 }
 0x18c   :  { %v189_v12 = vpop.permute.xlu0 %188 }
 0x18d   :  { %v194_v13 = vsel %vm141_vm2, %v189_v12, 0 }
 0x18e   :  { %1233 = vmatpush3.bf16.xpose.msra.mxu0 %v194_v13 }
 0x18f   :  { %1244 = vmatprep.subr.bf16.mxu0 %v1488_v0 }
 0x191   :  { %1229 = vmatmul.mubr.msk.bf16.vlgmr.msra.gmra.mrb[0].mxu1 %vm141_vm2, %v1593_v5 }
 0x192   :  { %1240 = vmatprep.mubr.msk.bf16.mxu1 %vm1489_vm0, %v1488_v0 }
 0x195   :  { %1235 = vmatmul.mubr.msk.bf16.vlgmr.msra.gmra.mrb[4].mxu0 %vm141_vm2, %v1596_v9 }
 0x196   :  { %1246 = vmatprep.mubr.msk.bf16.mxu0 %vm1489_vm0, %v1488_v0 }
 0x264   :  { %v182_v18 = vpop.f32.mrb[0].mxu1 }
 0x265   :  { %v238_v19 = vsel %vm1611_vm3, %v182_v18, -1e+30  ;;  %v1230_v20 = vpop.f32.mrb[1].mxu1 }
 0x266   :  { %v185_v21 = vpop.f32.mrb[2].mxu1  ;;  %v240_v22 = vsel %vm141_vm2, %v238_v19, -inf }
 0x267   :  { %241 = vmax.xlane.f32.xlu1 %v240_v22  ;;  %v1231_v23 = vpop.f32.mrb[3].mxu1 }
 0x268   :  { %v230_v24 = vpop.f32.mrb[4].mxu0 }
 0x269   :  { %v239_v25 = vsel %vm1611_vm3, %v230_v24, -1e+30  ;;  %v1236_v26 = vpop.f32.mrb[5].mxu0 }
 0x26a   :  { %v233_v27 = vpop.f32.mrb[6].mxu0  ;;  %v243_v28 = vsel %vm141_vm2, %v239_v25, -inf }
 0x26b   :  { %244 = vmax.xlane.f32.xlu1 %v243_v28  ;;  %v1237_v29 = vpop.f32.mrb[7].mxu0 }
 0x27c   :  { %264 = vrot.lane.b32.xlu1 %v1593_v5, %s1485_s27 }
 0x280   :  { %313 = vrot.lane.b32.xlu1 %v1596_v9, %s1485_s27  ;;  %s1493_s27 = smov 56  }
 0x284   :  { %365 = vrot.lane.b32.xlu1 %v1593_v5, %s1491_s25 }
 0x2f4   :  { %v242_v30 = vpop.xlane.xlu1 %241 }
 0x2f5   :  { %v246_v31 = vsub.f32 %v238_v19, %v242_v30 }
 0x2f7   :  { %v248_v32 = vmul.f32 1.442695, %v246_v31 }
 0x2f8   :  { %v245_v33 = vpop.xlane.xlu1 %244 }
 0x2f9   :  { %1357 = vpow2.f32 %v248_v32  ;;  %v247_v34 = vsub.f32 %v239_v25, %v245_v33 }
 0x2fb   :  { %v250_v35 = vmul.f32 1.442695, %v247_v34 }
 0x2fc   :  { %v265_v36 = vpop.permute.xlu1 %264 }
 0x2fd   :  { %1359 = vpow2.f32 %v250_v35  ;;  %v271_v37 = vsel %vm269_vm4, %v265_v36, 0 }
 0x2fe   :  { %1239 = vmatpush3.bf16.msra.mxu1 %v271_v37 }
 0x2ff   :  { %1250 = vmatprep.subr.bf16.mxu1 %v1488_v0 }
 0x300   :  { %v314_v38 = vpop.permute.xlu1 %313 }
 0x301   :  { %v319_v39 = vsel %vm269_vm4, %v314_v38, 0 }
 0x302   :  { %1245 = vmatpush3.bf16.msra.mxu0 %v319_v39 }
 0x303   :  { %v1358_v40 = vpop.eup %1357  ;;  %1256 = vmatprep.subr.bf16.mxu0 %v1488_v0 }
 0x304   :  { %v252_v41 = vsel %vm141_vm2, %v1358_v40, 0.0  ;;  %v366_v44 = vpop.permute.xlu1 %365 }
 0x305   :  { %253 = vadd.xlane.f32.xlu0 %v252_v41  ;;  %v371_v51 = vsel %vm141_vm2, %v366_v44, 0 }
 0x307   :  { %v1360_v42 = vpop.eup %1359 }
 0x308   :  { %v255_v43 = vsel %vm141_vm2, %v1360_v42, 0.0 }
 0x309   :  { %256 = vadd.xlane.f32.xlu1 %v255_v43 }
 0x31a   :  { %415 = vrot.lane.b32.xlu1 %v1596_v9, %s1491_s25 }
 0x31b   :  { %363 = vrot.lane.b32.xlu0 %v1593_v5, %s1492_s26 }
 0x31e   :  { %413 = vrot.lane.b32.xlu1 %v1596_v9, %s1492_s26 }
 0x392   :  { %v254_v45 = vpop.xlane.xlu0 %253 }
 0x393   :  { %1361 = vrcp.f32 %v254_v45 }
 0x396   :  { %v257_v46 = vpop.xlane.xlu1 %256  ;;  %v364_v56 = vpop.permute.xlu0 %363 }
 0x397   :  { %1363 = vrcp.f32 %v257_v46 }
 0x39a   :  { %v416_v53 = vpop.permute.xlu1 %415 }
 0x39b   :  { %v421_v55 = vsel %vm141_vm2, %v416_v53, 0 }
 0x39d   :  { %v1362_v47 = vpop.eup %1361 }
 0x39e   :  { %v260_v48 = vmul.f32 %v1362_v47, %v1358_v40  ;;  %v414_v57 = vpop.permute.xlu1 %413 }
 0x3a0   :  { %v262_v49 = vpack.c.bf16 %v260_v48, %v260_v48 }
 0x3a1   :  { %v1364_v50 = vpop.eup %1363 }
 0x3a2   :  { %v261_v52 = vmul.f32 %v1364_v50, %v1360_v42  ;;  %1241 = vmatmul.mubr.msk.bf16.vlgmr.msra.gmra.mrb[4].mxu1 %vm141_vm2, %v262_v49 }
 0x3a3   :  { %1251 = vmatpush3.bf16.xpose.msra.mxu1 %v371_v51  ;;  %1252 = vmatprep.mubr.msk.bf16.mxu1 %vm1489_vm0, %v1488_v0 }
 0x3a4   :  { %v263_v54 = vpack.c.bf16 %v261_v52, %v261_v52  ;;  %1262 = vmatprep.subr.bf16.mxu1 %v1488_v0 }
 0x3a6   :  { %1247 = vmatmul.mubr.msk.bf16.vlgmr.msra.gmra.mrb[8].mxu0 %vm141_vm2, %v263_v54 }
 0x3a7   :  { %1257 = vmatpush3.bf16.xpose.msra.mxu0 %v421_v55  ;;  %1258 = vmatprep.mubr.msk.bf16.mxu0 %vm1489_vm0, %v1488_v0 }
 0x3a8   :  { %1268 = vmatprep.subr.bf16.mxu0 %v1488_v0 }
 0x3aa   :  { %1253 = vmatmul.mubr.msk.bf16.vlgmr.msra.gmra.mrb[8].mxu1 %vm141_vm2, %v364_v56 }
 0x3ab   :  { %1264 = vmatprep.mubr.msk.bf16.mxu1 %vm1489_vm0, %v1488_v0 }
 0x3ae   :  { %1259 = vmatmul.mubr.msk.bf16.vlgmr.msra.gmra.mrb[12].mxu0 %vm141_vm2, %v414_v57 }
 0x3af   :  { %1270 = vmatprep.mubr.msk.bf16.mxu0 %vm1489_vm0, %v1488_v0 }
 0x475   :  { %v307_v58 = vpop.f32.mrb[4].mxu1 }
 0x476   :  { %361 = vst.msk [vmem:[#allocation2] sm:$0xff] %vm141_vm2, %v307_v58  ;;  %v1242_v59 = vpop.f32.mrb[5].mxu1 }
 0x477   :  { %v310_v60 = vpop.f32.mrb[6].mxu1 }
 0x478   :  { %v1243_v61 = vpop.f32.mrb[7].mxu1 }
 0x479   :  { %v355_v62 = vpop.f32.mrb[8].mxu0 }
 0x47a   :  { %362 = vst.msk [vmem:[#allocation2 + $0x8] sm:$0xff] %vm141_vm2, %v355_v62  ;;  %v1248_v63 = vpop.f32.mrb[9].mxu0 }
 0x47b   :  { %v358_v1 = vpop.f32.mrb[10].mxu0 }
 0x47c   :  { %v1249_v2 = vpop.f32.mrb[11].mxu0 }
 0x47d   :  { %v407_v3 = vpop.f32.mrb[8].mxu1 }
 0x47e   :  { %v463_v4 = vsel %vm1611_vm3, %v407_v3, -1e+30  ;;  %v1254_v6 = vpop.f32.mrb[9].mxu1 }
 0x47f   :  { %v410_v7 = vpop.f32.mrb[10].mxu1  ;;  %v465_v8 = vsel %vm141_vm2, %v463_v4, -inf }
 0x480   :  { %466 = vmax.xlane.f32.xlu1 %v465_v8  ;;  %v1255_v10 = vpop.f32.mrb[11].mxu1 }
 0x481   :  { %v457_v11 = vpop.f32.mrb[12].mxu0 }
 0x482   :  { %v464_v12 = vsel %vm1611_vm3, %v457_v11, -1e+30  ;;  %v1260_v13 = vpop.f32.mrb[13].mxu0 }
 0x483   :  { %v460_v14 = vpop.f32.mrb[14].mxu0  ;;  %v468_v15 = vsel %vm141_vm2, %v464_v12, -inf }
 0x484   :  { %469 = vmax.xlane.f32.xlu0 %v468_v15  ;;  %v1261_v16 = vpop.f32.mrb[15].mxu0 }
 0x491   :  { %489 = vrot.lane.b32.xlu1 %v1593_v5, %s1493_s27 }
 0x495   :  { %598 = vrot.lane.b32.xlu1 %v1593_v5, %s1494_s28 }
 0x49a   :  { %537 = vrot.lane.b32.xlu0 %v1596_v9, %s1493_s27 }
 0x49e   :  { %596 = vrot.lane.b32.xlu0 %v1593_v5, %s1495_s29 }
 0x50d   :  { %v467_v18 = vpop.xlane.xlu1 %466 }
 0x50e   :  { %v471_v19 = vsub.f32 %v463_v4, %v467_v18 }
 0x510   :  { %v473_v20 = vmul.f32 1.442695, %v471_v19 }
 0x511   :  { %v490_v21 = vpop.permute.xlu1 %489  ;;  %v470_v22 = vpop.xlane.xlu0 %469 }
 0x512   :  { %1365 = vpow2.f32 %v473_v20  ;;  %v495_v23 = vsel %vm269_vm4, %v490_v21, 0  ;;  %v472_v24 = vsub.f32 %v464_v12, %v470_v22 }
 0x513   :  { %1263 = vmatpush3.bf16.msra.mxu1 %v495_v23 }
 0x514   :  { %v475_v25 = vmul.f32 1.442695, %v472_v24  ;;  %1274 = vmatprep.subr.bf16.mxu1 %v1488_v0 }
 0x515   :  { %v538_v26 = vpop.permute.xlu0 %537  ;;  %v599_v32 = vpop.permute.xlu1 %598 }
 0x516   :  { %1367 = vpow2.f32 %v475_v25  ;;  %v543_v27 = vsel %vm269_vm4, %v538_v26, 0  ;;  %v604_v39 = vsel %vm141_vm2, %v599_v32, 0 }
 0x517   :  { %1269 = vmatpush3.bf16.msra.mxu0 %v543_v27 }
 0x518   :  { %1280 = vmatprep.subr.bf16.mxu0 %v1488_v0 }
 0x519   :  { %v597_v44 = vpop.permute.xlu0 %596 }
 0x51c   :  { %v1366_v28 = vpop.eup %1365 }
 0x51d   :  { %v477_v29 = vsel %vm141_vm2, %v1366_v28, 0.0 }
 0x51e   :  { %478 = vadd.xlane.f32.xlu1 %v477_v29 }
 0x520   :  { %v1368_v30 = vpop.eup %1367 }
 0x521   :  { %v480_v31 = vsel %vm141_vm2, %v1368_v30, 0.0 }
 0x522   :  { %481 = vadd.xlane.f32.xlu1 %v480_v31 }
 0x533   :  { %648 = vrot.lane.b32.xlu1 %v1596_v9, %s1494_s28 }
 0x537   :  { %646 = vrot.lane.b32.xlu1 %v1596_v9, %s1495_s29 }
 0x5ab   :  { %v479_v33 = vpop.xlane.xlu1 %478 }
 0x5ac   :  { %1369 = vrcp.f32 %v479_v33 }
 0x5af   :  { %v482_v34 = vpop.xlane.xlu1 %481 }
 0x5b0   :  { %1371 = vrcp.f32 %v482_v34 }
 0x5b3   :  { %v649_v41 = vpop.permute.xlu1 %648 }
 0x5b4   :  { %v654_v43 = vsel %vm141_vm2, %v649_v41, 0 }
 0x5b6   :  { %v1370_v35 = vpop.eup %1369 }
 0x5b7   :  { %v485_v36 = vmul.f32 %v1370_v35, %v1366_v28  ;;  %v647_v45 = vpop.permute.xlu1 %646 }
 0x5b9   :  { %v487_v37 = vpack.c.bf16 %v485_v36, %v485_v36 }
 0x5ba   :  { %v1372_v38 = vpop.eup %1371 }
 0x5bb   :  { %v486_v40 = vmul.f32 %v1372_v38, %v1368_v30  ;;  %1265 = vmatmul.mubr.msk.bf16.vlgmr.msra.gmra.mrb[12].mxu1 %vm141_vm2, %v487_v37 }
 0x5bc   :  { %1275 = vmatpush3.bf16.xpose.msra.mxu1 %v604_v39  ;;  %1276 = vmatprep.mubr.msk.bf16.mxu1 %vm1489_vm0, %v1488_v0 }
 0x5bd   :  { %v488_v42 = vpack.c.bf16 %v486_v40, %v486_v40  ;;  %1286 = vmatprep.subr.bf16.mxu1 %v1488_v0 }
 0x5bf   :  { %1271 = vmatmul.mubr.msk.bf16.vlgmr.msra.gmra.mrb[16].mxu0 %vm141_vm2, %v488_v42 }
 0x5c0   :  { %1281 = vmatpush3.bf16.xpose.msra.mxu0 %v654_v43  ;;  %1282 = vmatprep.mubr.msk.bf16.mxu0 %vm1489_vm0, %v1488_v0 }
 0x5c1   :  { %1292 = vmatprep.subr.bf16.mxu0 %v1488_v0 }
 0x5c3   :  { %1277 = vmatmul.mubr.msk.bf16.vlgmr.msra.gmra.mrb[16].mxu1 %vm141_vm2, %v597_v44 }
 0x5c4   :  { %1288 = vmatprep.mubr.msk.bf16.mxu1 %vm1489_vm0, %v1488_v0 }
 0x5c7   :  { %1283 = vmatmul.mubr.msk.bf16.vlgmr.msra.gmra.mrb[20].mxu0 %vm141_vm2, %v647_v45 }
 0x5c8   :  { %1294 = vmatprep.mubr.msk.bf16.mxu0 %vm1489_vm0, %v1488_v0 }
 0x68e   :  { %v1687_v46 = vpop.f32.mrb[12].mxu1 }
 0x68f   :  { %v1266_v47 = vpop.f32.mrb[13].mxu1 }
 0x690   :  { %v534_v48 = vpop.f32.mrb[14].mxu1 }
 0x691   :  { %v1267_v49 = vpop.f32.mrb[15].mxu1 }
 0x692   :  { %v1689_v50 = vpop.f32.mrb[16].mxu0 }
 0x693   :  { %v1272_v51 = vpop.f32.mrb[17].mxu0 }
 0x694   :  { %v582_v52 = vpop.f32.mrb[18].mxu0 }
 0x695   :  { %v1273_v53 = vpop.f32.mrb[19].mxu0 }
 0x696   :  { %v640_v54 = vpop.f32.mrb[16].mxu1 }
 0x697   :  { %v696_v55 = vsel %vm1611_vm3, %v640_v54, -1e+30  ;;  %v1278_v56 = vpop.f32.mrb[17].mxu1 }
 0x698   :  { %v643_v57 = vpop.f32.mrb[18].mxu1  ;;  %v698_v58 = vsel %vm141_vm2, %v696_v55, -inf }
 0x699   :  { %699 = vmax.xlane.f32.xlu0 %v698_v58  ;;  %v1279_v59 = vpop.f32.mrb[19].mxu1 }
 0x69a   :  { %v690_v60 = vpop.f32.mrb[20].mxu0 }
 0x69b   :  { %v697_v61 = vsel %vm1611_vm3, %v690_v60, -1e+30  ;;  %v1284_v62 = vpop.f32.mrb[21].mxu0 }
 0x69c   :  { %v693_v63 = vpop.f32.mrb[22].mxu0  ;;  %v701_v1 = vsel %vm141_vm2, %v697_v61, -inf }
 0x69d   :  { %702 = vmax.xlane.f32.xlu1 %v701_v1  ;;  %v1285_v2 = vpop.f32.mrb[23].mxu0 }
 0x6ae   :  { %722 = vrot.lane.b32.xlu1 %v1593_v5, %s1496_s30 }
 0x6b2   :  { %831 = vrot.lane.b32.xlu1 %v1593_v5, %s1497_s5 }
 0x6b6   :  { %881 = vrot.lane.b32.xlu1 %v1596_v9, %s1497_s5 }
 0x6ba   :  { %879 = vrot.lane.b32.xlu1 %v1596_v9, %s1498_s6 }
 0x726   :  { %v700_v3 = vpop.xlane.xlu0 %699 }
 0x727   :  { %v704_v4 = vsub.f32 %v696_v55, %v700_v3 }
 0x729   :  { %v706_v6 = vmul.f32 1.442695, %v704_v4 }
 0x72a   :  { %v703_v7 = vpop.xlane.xlu1 %702 }
 0x72b   :  { %1373 = vpow2.f32 %v706_v6  ;;  %v705_v8 = vsub.f32 %v697_v61, %v703_v7 }
 0x72d   :  { %v708_v10 = vmul.f32 1.442695, %v705_v8 }
 0x72e   :  { %v723_v11 = vpop.permute.xlu1 %722 }
 0x72f   :  { %1375 = vpow2.f32 %v708_v10  ;;  %v728_v12 = vsel %vm269_vm4, %v723_v11, 0 }
 0x730   :  { %1287 = vmatpush3.bf16.msra.mxu1 %v728_v12 }
 0x731   :  { %1298 = vmatprep.subr.bf16.mxu1 %v1488_v0 }
 0x732   :  { %v832_v23 = vpop.permute.xlu1 %831 }
 0x733   :  { %v837_v27 = vsel %vm141_vm2, %v832_v23, 0 }
 0x735   :  { %v1374_v13 = vpop.eup %1373 }
 0x736   :  { %v710_v14 = vsel %vm141_vm2, %v1374_v13, 0.0  ;;  %v882_v29 = vpop.permute.xlu1 %881 }
 0x737   :  { %711 = vadd.xlane.f32.xlu0 %v710_v14  ;;  %v887_v31 = vsel %vm141_vm2, %v882_v29, 0 }
 0x739   :  { %v1376_v15 = vpop.eup %1375 }
 0x73a   :  { %v713_v16 = vsel %vm141_vm2, %v1376_v15, 0.0  ;;  %v880_v33 = vpop.permute.xlu1 %879 }
 0x73b   :  { %714 = vadd.xlane.f32.xlu0 %v713_v16  ;;  %v1355_v16 = vld [vmem:[#allocation8] sm:$0xff]  }
 0x751   :  { %770 = vrot.lane.b32.xlu0 %v1596_v9, %s1496_s30 }
 0x755   :  { %829 = vrot.lane.b32.xlu0 %v1593_v5, %s1498_s6 }
 0x7c4   :  { %v712_v18 = vpop.xlane.xlu0 %711 }
 0x7c5   :  { %1377 = vrcp.f32 %v712_v18  ;;  %v1356_v18 = vld [vmem:[#allocation8 + $0x8] sm:$0xff]  }
 0x7c8   :  { %v715_v19 = vpop.xlane.xlu0 %714 }
 0x7c9   :  { %1379 = vrcp.f32 %v715_v19 }
 0x7cc   :  { %v771_v20 = vpop.permute.xlu0 %770 }
 0x7cd   :  { %v776_v21 = vsel %vm269_vm4, %v771_v20, 0 }
 0x7ce   :  { %1293 = vmatpush3.bf16.msra.mxu0 %v776_v21 }
 0x7cf   :  { %v1378_v22 = vpop.eup %1377  ;;  %1304 = vmatprep.subr.bf16.mxu0 %v1488_v0 }
 0x7d0   :  { %v718_v24 = vmul.f32 %v1378_v22, %v1374_v13  ;;  %v830_v32 = vpop.permute.xlu0 %829 }
 0x7d2   :  { %v720_v25 = vpack.c.bf16 %v718_v24, %v718_v24 }
 0x7d3   :  { %v1380_v26 = vpop.eup %1379 }
 0x7d4   :  { %v719_v28 = vmul.f32 %v1380_v26, %v1376_v15  ;;  %1289 = vmatmul.mubr.msk.bf16.vlgmr.msra.gmra.mrb[20].mxu1 %vm141_vm2, %v720_v25 }
 0x7d5   :  { %1299 = vmatpush3.bf16.xpose.msra.mxu1 %v837_v27  ;;  %1300 = vmatprep.mubr.msk.bf16.mxu1 %vm1489_vm0, %v1488_v0 }
 0x7d6   :  { %v721_v30 = vpack.c.bf16 %v719_v28, %v719_v28  ;;  %1310 = vmatprep.subr.bf16.mxu1 %v1488_v0 }
 0x7d8   :  { %1295 = vmatmul.mubr.msk.bf16.vlgmr.msra.gmra.mrb[24].mxu0 %vm141_vm2, %v721_v30 }
 0x7d9   :  { %1305 = vmatpush3.bf16.xpose.msra.mxu0 %v887_v31  ;;  %1306 = vmatprep.mubr.msk.bf16.mxu0 %vm1489_vm0, %v1488_v0  ;;  %v1174_v31 = vld [vmem:[%s1773_s3] ss:$0 sm:$0xff] }
 0x7da   :  { %1316 = vmatprep.subr.bf16.mxu0 %v1488_v0 }
 0x7dc   :  { %1301 = vmatmul.mubr.msk.bf16.vlgmr.msra.gmra.mrb[24].mxu1 %vm141_vm2, %v830_v32 }
 0x7dd   :  { %1312 = vmatprep.mubr.msk.bf16.mxu1 %vm1489_vm0, %v1488_v0 }
 0x7e0   :  { %1307 = vmatmul.mubr.msk.bf16.vlgmr.msra.gmra.mrb[28].mxu0 %vm141_vm2, %v880_v33 }
 0x7e1   :  { %1318 = vmatprep.mubr.msk.bf16.mxu0 %vm1489_vm0, %v1488_v0 }
 0x8a7   :  { %v764_v34 = vpop.f32.mrb[20].mxu1 }
 0x8a8   :  { %v1290_v35 = vpop.f32.mrb[21].mxu1 }
 0x8a9   :  { %v767_v36 = vpop.f32.mrb[22].mxu1 }
 0x8aa   :  { %v1291_v37 = vpop.f32.mrb[23].mxu1 }
 0x8ab   :  { %v812_v38 = vpop.f32.mrb[24].mxu0 }
 0x8ac   :  { %v1296_v39 = vpop.f32.mrb[25].mxu0 }
 0x8ad   :  { %v815_v40 = vpop.f32.mrb[26].mxu0 }
 0x8ae   :  { %v1297_v41 = vpop.f32.mrb[27].mxu0 }
 0x8af   :  { %v873_v42 = vpop.f32.mrb[24].mxu1 }
 0x8b0   :  { %v929_v43 = vsel %vm1611_vm3, %v873_v42, -1e+30  ;;  %v1302_v44 = vpop.f32.mrb[25].mxu1 }
 0x8b1   :  { %v876_v45 = vpop.f32.mrb[26].mxu1  ;;  %v931_v47 = vsel %vm141_vm2, %v929_v43, -inf }
 0x8b2   :  { %932 = vmax.xlane.f32.xlu0 %v931_v47  ;;  %v1303_v48 = vpop.f32.mrb[27].mxu1 }
 0x8b3   :  { %v923_v49 = vpop.f32.mrb[28].mxu0 }
 0x8b4   :  { %v930_v51 = vsel %vm1611_vm3, %v923_v49, -1e+30  ;;  %v1308_v52 = vpop.f32.mrb[29].mxu0 }
 0x8b5   :  { %v926_v53 = vpop.f32.mrb[30].mxu0  ;;  %v934_v54 = vsel %vm141_vm2, %v930_v51, -inf }
 0x8b6   :  { %935 = vmax.xlane.f32.xlu1 %v934_v54  ;;  %v1309_v55 = vpop.f32.mrb[31].mxu0 }
 0x8c7   :  { %955 = vrot.lane.b32.xlu1 %v1593_v5, %s1499_s7 }
 0x8cb   :  { %587 = vrot.lane.b32.xlu1 %v1687_v46, %s1500_s8 }
 0x8cf   :  { %589 = vrot.lane.b32.xlu1 %v1689_v50, %s1500_s8 }
 0x8d3   :  { %822 = vrot.lane.b32.xlu1 %v812_v38, %s1501_s9 }
 0x93f   :  { %v933_v17 = vpop.xlane.xlu0 %932 }
 0x940   :  { %v937_v56 = vsub.f32 %v929_v43, %v933_v17 }
 0x942   :  { %v939_v57 = vmul.f32 1.442695, %v937_v56 }
 0x943   :  { %v936_v58 = vpop.xlane.xlu1 %935 }
 0x944   :  { %1381 = vpow2.f32 %v939_v57  ;;  %v938_v59 = vsub.f32 %v930_v51, %v936_v58 }
 0x946   :  { %v941_v60 = vmul.f32 1.442695, %v938_v59 }
 0x947   :  { %v956_v61 = vpop.permute.xlu1 %955 }
 0x948   :  { %1383 = vpow2.f32 %v941_v60  ;;  %v961_v5 = vsel %vm269_vm4, %v956_v61, 0 }
 0x949   :  { %1311 = vmatpush3.bf16.msra.mxu1 %v961_v5 }
 0x94a   :  { %1322 = vmatprep.subr.bf16.mxu1 %v1488_v0 }
 0x94b   :  { %v588_v46 = vpop.permute.xlu1 %587 }
 0x94c   :  { %594 = vst.msk [vmem:[#allocation2] sm:$0xff] %vm593_vm5, %v588_v46 }
 0x94e   :  { %v1382_v50 = vpop.eup %1381 }
 0x94f   :  { %v590_v62 = vpop.permute.xlu1 %589  ;;  %v943_v63 = vsel %vm141_vm2, %v1382_v50, 0.0 }
 0x950   :  { %595 = vst.msk [vmem:[#allocation2 + $0x8] sm:$0xff] %vm593_vm5, %v590_v62  ;;  %944 = vadd.xlane.f32.xlu0 %v943_v63 }
 0x952   :  { %v1384_v1 = vpop.eup %1383 }
 0x953   :  { %v823_v2 = vpop.permute.xlu1 %822  ;;  %v946_v3 = vsel %vm141_vm2, %v1384_v1, 0.0 }
 0x954   :  { %828 = vst.msk [vmem:[#allocation2 + $0x8] sm:$0xff] %vm826_vm6, %v823_v2  ;;  %947 = vadd.xlane.f32.xlu0 %v946_v3 }
 0x96a   :  { %1003 = vrot.lane.b32.xlu0 %v1596_v9, %s1499_s7 }
 0x96e   :  { %820 = vrot.lane.b32.xlu0 %v764_v34, %s1501_s9 }
 0x9dd   :  { %v945_v4 = vpop.xlane.xlu0 %944 }
 0x9de   :  { %1385 = vrcp.f32 %v945_v4 }
 0x9e1   :  { %v948_v6 = vpop.xlane.xlu0 %947 }
 0x9e2   :  { %1387 = vrcp.f32 %v948_v6 }
 0x9e5   :  { %v1004_v7 = vpop.permute.xlu0 %1003 }
 0x9e6   :  { %v1009_v8 = vsel %vm269_vm4, %v1004_v7, 0 }
 0x9e7   :  { %1317 = vmatpush3.bf16.msra.mxu0 %v1009_v8 }
 0x9e8   :  { %v1386_v10 = vpop.eup %1385 }
 0x9e9   :  { %v951_v11 = vmul.f32 %v1386_v10, %v1382_v50  ;;  %v821_v12 = vpop.permute.xlu0 %820 }
 0x9ea   :  { %827 = vst.msk [vmem:[#allocation2] sm:$0xff] %vm826_vm6, %v821_v12 }
 0x9eb   :  { %v953_v13 = vpack.c.bf16 %v951_v11, %v951_v11 }
 0x9ec   :  { %v1388_v14 = vpop.eup %1387 }
 0x9ed   :  { %v952_v15 = vmul.f32 %v1388_v14, %v1384_v1  ;;  %1313 = vmatmul.mubr.msk.bf16.vlgmr.msra.gmra.mrb[28].mxu1 %vm141_vm2, %v953_v13 }
 0x9ee   :  { %1326 = vmatprep.mubr.msk.bf16.mxu1 %vm1489_vm0, %v1488_v0  ;;  %1323 = vmatpush3.bf16.msra.mxu1 %v1355_v16 }
 0x9ef   :  { %v954_v9 = vpack.c.bf16 %v952_v15, %v952_v15  ;;  %1324 = vmatprep.subr.bf16.mxu1 %v1488_v0 }
 0x9f1   :  { %1319 = vmatmul.mubr.msk.bf16.vlgmr.msra.gmra.mrb[32].mxu0 %vm141_vm2, %v954_v9 }
 0x9f2   :  { %1325 = vmatpush3.bf16.msra.mxu1 %v1356_v18 }
 0xac0   :  { %v997_v19 = vpop.f32.mrb[28].mxu1 }
 0xac1   :  { %1053 = vrot.lane.b32.xlu0 %v997_v19, %s1502_s10  ;;  %v1314_v20 = vpop.f32.mrb[29].mxu1 }
 0xac2   :  { %v1000_v21 = vpop.f32.mrb[30].mxu1 }
 0xac3   :  { %v1315_v22 = vpop.f32.mrb[31].mxu1 }
 0xac4   :  { %v1045_v23 = vpop.f32.mrb[32].mxu0 }
 0xac5   :  { %1055 = vrot.lane.b32.xlu1 %v1045_v23, %s1502_s10  ;;  %v1320_v24 = vpop.f32.mrb[33].mxu0 }
 0xac6   :  { %v1048_v25 = vpop.f32.mrb[34].mxu0 }
 0xac7   :  { %v1321_v26 = vpop.f32.mrb[35].mxu0 }
 0xb33   :  { %v1054_v27 = vpop.permute.xlu0 %1053 }
 0xb34   :  { %1060 = vst.msk [vmem:[#allocation2] sm:$0xff] %vm1059_vm7, %v1054_v27 }
 0xb37   :  { %v1056_v28 = vpop.permute.xlu1 %1055 }
 0xb38   :  { %1061 = vst.msk [vmem:[#allocation2 + $0x8] sm:$0xff] %vm1059_vm7, %v1056_v28 }
 0xb3b   :  { %v1066_v29 = vld [vmem:[#allocation2] sm:$0xff] }
 0xb3f   :  { %v1067_v30 = vld [vmem:[#allocation2 + $0x8] sm:$0xff] }
 0xb40   :  { %v1068_v0 = vpack.c.bf16 %v1067_v30, %v1066_v29 }
 0xb42   :  { %1327 = vmatmul.mubr.msk.bf16.vlgmr.msra.gmra.mrb[32].mxu1 %vm83_vm1, %v1068_v0 }
 0xc15   :  { %v1125_v32 = vpop.f32.mrb[32].mxu1 }
 0xc16   :  { %v1126_v33 = vadd.f32 %v1174_v31, %v1125_v32  ;;  %v1328_v34 = vpop.f32.mrb[33].mxu1 }
 0xc17   :  { %v1128_v35 = vpop.f32.mrb[34].mxu1 }
 0xc18   :  { %1132 = vst.msk [vmem:[#allocation9] sm:$0xff] %vm83_vm1, %v1126_v33  ;;  %v1129_v36 = vadd.f32 %v1174_v31, %v1128_v35  ;;  %v1329_v37 = vpop.f32.mrb[35].mxu1 }
 0xc1a   :  { %1133 = vst.msk [vmem:[#allocation9 + $0x8] sm:$0xff] %vm83_vm1, %v1129_v36 }
 0xc1b   :  { %1466 = shalt.err (!%p1463_p0)
}
 0xc1c   :  { %s1467_s16 = scalar_lea.hbm %s1774_s4, 256 }
 0xc1d   :  { %p1468_p1 = scmp.ne.s32.totalorder %s1774_s4, %s1467_s16  ;;  %p1471_p2 = scmp.lt.u32.totalorder %s1467_s16, %s1774_s4 }
 0xc1f   :  { %p1473_p3 = pnand %p1471_p2, %p1468_p1 }
 0xc21   :  { %1476 = shalt.err (!%p1473_p3)
}
 0xc22   :  { %s1504_s22 = smov 128  }
 0xc23   :  { %1145 = dma.vmem_to_hbm [thread:$0]  %s1140_s13, 256, %s1774_s4, [#allocation5], %s1504_s22, %s1504_s22, %s1500_s8  }
 0xc24   :  { %1481 = dma.done.wait [#allocation5], 256  }
 0xc25   :  { %1482 = vsyncadd [#allocation5], 4294967040 }
 0xc26   :  { %1149 = vsyncpa [#allocation4], 1 }
 0xc27   :  { %1150 = vsyncpa [#allocation7], 1 }
 0xc28   :  { %1151 = vsyncpa [#allocation5], 1 }

</bundles_post_ra>
